<compile_context>
chip_gen: v7x
topology: tpu7x:2x2x1
jax: 0.10.0
libtpu: 0.0.40
codegen_flags: <defaults>
</compile_context>

<pallas_src>
import functools

import jax
import jax.numpy as jnp
from jax import lax
from jax.experimental import pallas as pl
from jax.experimental.pallas import tpu as pltpu

_MIB = 1024 * 1024


def _round_up(v, m):
    return ((v + m - 1) // m) * m


def _usable_vmem_bytes():
    try:
        cap = int(pltpu.get_tpu_info().vmem_capacity_bytes)
    except Exception:
        cap = 64 * _MIB          # conservative: v7x physical VMEM per TensorCore
    return (cap * 3) // 4        # leave room for Mosaic internal scratch


# --------------------------------------------------------------------------
# Path 1: monolithic (N, N) Gram accumulator, grid streams the M axis.
# --------------------------------------------------------------------------
def _decorr_mono_kernel(x_ref, out_ref, gram_acc, sum_acc, *, n, m_total, tk, num_k):
    k = pl.program_id(0)

    @pl.when(k == 0)
    def _init():
        gram_acc[...] = jnp.zeros_like(gram_acc)
        sum_acc[...] = jnp.zeros_like(sum_acc)

    def _accum(xt):
        # Raw Gram on the MXU (transpose-free: contract dim 1 of both operands).
        gram_acc[...] += lax.dot_general(
            xt, xt, dimension_numbers=(((1,), (1,)), ((), ())),
            preferred_element_type=jnp.float32)
        if num_k == 1:
            # Single pass: one cross-lane reduce, not in any hot loop.
            sum_acc[...] += jnp.sum(xt, axis=1, keepdims=True)
        else:
            # Streaming: lane-local partial row sums (pure VPU adds of (N,128)
            # planes); the cross-lane reduce happens once in _finalize.
            part = sum_acc[...]
            for c in range(tk // 128):
                part = part + xt[:, c * 128:(c + 1) * 128]
            sum_acc[...] = part

    xf = x_ref[...].astype(jnp.float32)
    tail = m_total % tk
    if tail == 0:
        _accum(xf)
    else:
        # Ragged last tile: keep iota/compare/select off the steady-state path.
        @pl.when(k < num_k - 1)
        def _steady():
            _accum(xf)

        @pl.when(k == num_k - 1)
        def _tail():
            cols = lax.broadcasted_iota(jnp.int32, xf.shape, 1)
            _accum(jnp.where(cols < tail, xf, 0.0))

    @pl.when(k == num_k - 1)
    def _finalize():
        inv_m = jnp.float32(1.0 / m_total)
        s = jnp.sum(sum_acc[...], axis=1, keepdims=True)          # (N, 1)
        g = gram_acc[...] - (s * s.T) * inv_m                     # centered Gram
        row = lax.broadcasted_iota(jnp.int32, (n, n), 0)
        col = lax.broadcasted_iota(jnp.int32, (n, n), 1)
        # Variances come from the Gram diagonal (no per-step ss accumulator).
        d = jnp.sum(jnp.where(row == col, g, 0.0), axis=1, keepdims=True)
        inv_std = lax.rsqrt(d)                                     # EUP
        corr = jnp.clip(g * inv_std * inv_std.T, -1.0, 1.0)       # VPU muls
        total = jnp.sum(jnp.where(col > row, jnp.abs(corr), 0.0))
        out_ref[0, 0] = total / jnp.float32(n * n)


# --------------------------------------------------------------------------
# Path 2: row-block Gram slabs, leading "parallel" axis (megacore / large N).
# --------------------------------------------------------------------------
def _decorr_rowblock_kernel(x_ref, out_ref, gram_acc, sum_acc, ss_acc, *,
                            n, tn, tk, m_total, num_k):
    i = pl.program_id(0)
    k = pl.program_id(1)
    row0 = pl.multiple_of(i * tn, tn)

    @pl.when(k == 0)
    def _init():
        gram_acc[...] = jnp.zeros_like(gram_acc)
        sum_acc[...] = jnp.zeros_like(sum_acc)
        ss_acc[...] = jnp.zeros_like(ss_acc)

    def _accum(lhs, xt):
        gram_acc[...] += lax.dot_general(
            lhs, xt, dimension_numbers=(((1,), (1,)), ((), ())),
            preferred_element_type=jnp.float32)
        if num_k == 1:
            sum_acc[...] += jnp.sum(xt, axis=1, keepdims=True)
            ss_acc[...] += jnp.sum(xt * xt, axis=1, keepdims=True)
        else:
            sp, ssp = sum_acc[...], ss_acc[...]
            for c in range(tk // 128):
                ch = xt[:, c * 128:(c + 1) * 128]
                sp = sp + ch
                ssp = ssp + ch * ch
            sum_acc[...] = sp
            ss_acc[...] = ssp

    xt = x_ref[...].astype(jnp.float32)                    # (n_pad, tk): all rows
    lhs = x_ref[pl.ds(row0, tn), :].astype(jnp.float32)    # (tn, tk): this block's rows
    tail = m_total % tk
    if tail == 0:
        _accum(lhs, xt)
    else:
        @pl.when(k < num_k - 1)
        def _steady():
            _accum(lhs, xt)

        @pl.when(k == num_k - 1)
        def _tail():
            cols_full = lax.broadcasted_iota(jnp.int32, xt.shape, 1)
            cols_blk = lax.broadcasted_iota(jnp.int32, lhs.shape, 1)
            _accum(jnp.where(cols_blk < tail, lhs, 0.0),
                   jnp.where(cols_full < tail, xt, 0.0))

    @pl.when(k == num_k - 1)
    def _finalize():
        inv_m = jnp.float32(1.0 / m_total)
        s_all = jnp.sum(sum_acc[...], axis=1, keepdims=True)          # (n_pad, 1)
        ss_all = jnp.sum(ss_acc[...], axis=1, keepdims=True)
        inv_std_all = lax.rsqrt(ss_all - s_all * s_all * inv_m)
        s_blk = jnp.sum(sum_acc[pl.ds(row0, tn), :], axis=1, keepdims=True)   # (tn, 1)
        ss_blk = jnp.sum(ss_acc[pl.ds(row0, tn), :], axis=1, keepdims=True)
        inv_std_blk = lax.rsqrt(ss_blk - s_blk * s_blk * inv_m)
        g = gram_acc[...] - (s_blk * s_all.T) * inv_m                  # (tn, n_pad)
        corr = jnp.clip(g * inv_std_blk * inv_std_all.T, -1.0, 1.0)
        grow = row0 + lax.broadcasted_iota(jnp.int32, g.shape, 0)      # global row ids
        col = lax.broadcasted_iota(jnp.int32, g.shape, 1)
        # Strict upper triangle; drop zero-padded rows/cols (their corr is NaN,
        # but select never picks them).
        keep = (col > grow) & (grow < n) & (col < n)
        partial = jnp.sum(jnp.where(keep, jnp.abs(corr), 0.0))
        out_ref[...] = jnp.full((1, 8, 128), partial, jnp.float32)     # lane-dense slot


# --------------------------------------------------------------------------
# Wrapper: budget-driven tiling + path selection.
# --------------------------------------------------------------------------
def decorrelation_tt_loss(x, *, tk=None, tn=None):
    """x: (N, M) array (rows = variables, torch.corrcoef layout).

    tk: observation-axis tile override (rounded down to a multiple of 128, or M).
    tn: forces the row-block path with (TN, N) Gram slabs (rounded up to x8).
    Both are auto-selected from the VMEM budget when None.  Returns f32 scalar.
    """
    n, m = x.shape
    isz = jnp.dtype(x.dtype).itemsize
    usable = _usable_vmem_bytes()
    margin = 2 * _MIB

    def pad8(v):
        return _round_up(v, 8)

    def pad128(v):
        return _round_up(v, 128)

    def in_bytes(rows, t):                      # double-buffered input tile
        return 2 * pad8(rows) * pad128(t) * isz

    def pick_tk(rows, acc_bytes, override):
        if override is not None:
            t = int(override)
            return m if t >= m else max(128, (t // 128) * 128)
        if acc_bytes + in_bytes(rows, m) + margin <= usable:
            return m                            # whole x resident: single grid step
        per_buf = max(0, usable - acc_bytes - margin) // 2
        fit = (per_buf // (pad8(rows) * isz)) // 128 * 128
        tgt = max(128, (4 * _MIB // (pad8(rows) * isz)) // 128 * 128)
        t = max(128, min(fit, tgt))
        return m if t >= m else t

    mono_acc_bytes = pad8(n) * pad128(n) * 4 + pad8(n) * 128 * 4
    # Row-block path when the monolithic f32 Gram no longer fits the budget
    # (v7x: 64 MiB physical), or when N is clearly MXU-bound (megacore split
    # pays for the nb-fold re-read of x), or when explicitly forced.
    use_rowblock = (tn is not None) or (n >= 2048) or (
        mono_acc_bytes + in_bytes(n, 128) + margin > usable)

    if not use_rowblock:
        tk = pick_tk(n, mono_acc_bytes, tk)
        num_k = pl.cdiv(m, tk)
        sum_cols = 1 if num_k == 1 else 128
        req = in_bytes(n, tk) + mono_acc_bytes
        kernel = functools.partial(_decorr_mono_kernel,
                                   n=n, m_total=m, tk=tk, num_k=num_k)
        out = pl.pallas_call(
            kernel,
            out_shape=jax.ShapeDtypeStruct((1, 1), jnp.float32),
            grid_spec=pltpu.PrefetchScalarGridSpec(
                num_scalar_prefetch=0,
                grid=(num_k,),
                in_specs=[pl.BlockSpec((n, tk), lambda k: (0, k))],
                out_specs=pl.BlockSpec(memory_space=pltpu.SMEM),
                scratch_shapes=[
                    pltpu.VMEM((n, n), jnp.float32),          # Gram accumulator
                    pltpu.VMEM((n, sum_cols), jnp.float32),   # lane-local row sums
                ],
            ),
            compiler_params=pltpu.CompilerParams(
                dimension_semantics=("arbitrary",),           # reduction over M
                vmem_limit_bytes=int(min(usable + margin, req + 4 * _MIB)),
            ),
            cost_estimate=pl.CostEstimate(
                flops=2 * n * n * m + 3 * n * m,
                transcendentals=n,
                bytes_accessed=n * m * isz + 4),
        )(x)
        return out[0, 0]

    # ---- row-block path (large N and/or explicit tn) -----------------------
    if tn is None:
        tn = 512
        while tn > 128 and pad8(tn) * pad128(_round_up(n, tn)) * 4 > usable // 3:
            tn //= 2
    else:
        tn = max(8, _round_up(int(tn), 8))
    nb = pl.cdiv(n, tn)
    n_pad = nb * tn
    if n_pad != n:
        # Zero-pad the variable axis so every row block is full; padded rows
        # have zero variance -> NaN correlations, dropped by the in-kernel mask.
        x = jnp.pad(x, ((0, n_pad - n), (0, 0)))
    gram_bytes = pad8(tn) * pad128(n_pad) * 4
    part_bytes = 2 * pad8(n_pad) * 128 * 4
    tk = pick_tk(n_pad, gram_bytes + part_bytes, tk)
    num_k = pl.cdiv(m, tk)
    sum_cols = 1 if num_k == 1 else 128
    req = in_bytes(n_pad, tk) + gram_bytes + part_bytes + nb * 8 * 128 * 4
    kernel = functools.partial(_decorr_rowblock_kernel,
                               n=n, tn=tn, tk=tk, m_total=m, num_k=num_k)
    out = pl.pallas_call(
        kernel,
        out_shape=jax.ShapeDtypeStruct((nb, 8, 128), jnp.float32),
        grid_spec=pltpu.PrefetchScalarGridSpec(
            num_scalar_prefetch=0,
            grid=(nb, num_k),
            in_specs=[pl.BlockSpec((n_pad, tk), lambda i, k: (0, k))],
            out_specs=pl.BlockSpec((1, 8, 128), lambda i, k: (i, 0, 0)),
            scratch_shapes=[
                pltpu.VMEM((tn, n_pad), jnp.float32),         # Gram slab for this row block
                pltpu.VMEM((n_pad, sum_cols), jnp.float32),   # lane-local row sums (all rows)
                pltpu.VMEM((n_pad, sum_cols), jnp.float32),   # lane-local row sums of squares
            ],
        ),
        compiler_params=pltpu.CompilerParams(
            dimension_semantics=("parallel", "arbitrary"),    # row blocks // , M reduction
            vmem_limit_bytes=int(min(usable + margin, req + 4 * _MIB)),
        ),
        cost_estimate=pl.CostEstimate(
            flops=2 * n_pad * n_pad * m + 4 * n_pad * m * nb,
            transcendentals=2 * n_pad * nb,
            bytes_accessed=nb * n_pad * m * isz + nb * 8 * 128 * 4),
    )(x)
    return jnp.sum(out[:, 0, 0]) / jnp.float32(n * n)


def _reference(x):
    """Pure-JAX reference matching torch.corrcoef semantics."""
    x = x.astype(jnp.float32)
    c = jnp.corrcoef(x)
    n = x.shape[0]
    mask = jnp.triu(jnp.ones((n, n), dtype=bool), k=1)
    return jnp.sum(jnp.where(mask, jnp.abs(c), 0.0)) / (n * n)


if __name__ == "__main__":
    key = jax.random.PRNGKey(0)
    k1, k2, k3 = jax.random.split(key, 3)

    # 1) Representation tensor (batch 8, hidden 128): auto path keeps the whole
    #    tensor resident -> single grid step, no streaming overhead.
    x1 = jax.random.normal(k1, (8, 128), dtype=jnp.float32)
    l1 = decorrelation_tt_loss(x1)
    jax.block_until_ready(l1)
    r1 = _reference(x1)
    assert jnp.allclose(l1, r1, rtol=1e-4, atol=1e-5), (l1, r1)

    # 2) Force the streaming monolithic path (multiple M tiles + ragged tail).
    x2 = jax.random.normal(k2, (16, 1000), dtype=jnp.float32)
    l2 = decorrelation_tt_loss(x2, tk=256)
    jax.block_until_ready(l2)
    r2 = _reference(x2)
    assert jnp.allclose(l2, r2, rtol=1e-4, atol=1e-5), (l2, r2)

    # 3) Force the row-block ("parallel" Gram-slab) path at a small shape.
    x3 = jax.random.normal(k3, (24, 400), dtype=jnp.float32)
    l3 = decorrelation_tt_loss(x3, tk=128, tn=8)
    jax.block_until_ready(l3)
    r3 = _reference(x3)
    assert jnp.allclose(l3, r3, rtol=1e-4, atol=1e-5), (l3, r3)

    print("KERNEL_OK")
</pallas_src>

<mosaic_0001>
module attributes {stable_mosaic.version = 11 : i64} {
  func.func @_decorr_mono_kernel(%arg0: i32, %arg1: memref<8x128xf32, #tpu.memory_space<vmem>>, %arg2: memref<1x1xf32, #tpu.memory_space<smem>>, %arg3: memref<8x8xf32, #tpu.memory_space<vmem>>, %arg4: memref<8x1xf32, #tpu.memory_space<vmem>>) attributes {dimension_semantics = [#tpu.dimension_semantics<arbitrary>], iteration_bounds = array<i64: 1>, scalar_prefetch = 0 : i64, scratch_operands = 2 : i64, tpu.core_type = #tpu.core_type<tc>, window_params = [{transform_indices = @transform_0, window_bounds = array<i64: 8, 128>}, {transform_indices = @transform_1, window_bounds = array<i64: 1, 1>}]} {
    %c0_i32 = arith.constant 0 : i32
    %0 = arith.cmpi eq, %arg0, %c0_i32 : i32
    %1 = arith.extui %0 : i1 to i32
    %c0_i32_0 = arith.constant 0 : i32
    %2 = arith.cmpi ne, %1, %c0_i32_0 : i32
    scf.if %2 {
      %cst_13 = arith.constant 0.000000e+00 : f32
      %16 = vector.broadcast %cst_13 : f32 to vector<8x8xf32>
      %c0_14 = arith.constant 0 : index
      %c0_15 = arith.constant 0 : index
      %17 = vector.load %arg3[%c0_14, %c0_15] : memref<8x8xf32, #tpu.memory_space<vmem>>, vector<8x8xf32>
      tpu.vector_store %arg3[%c0_14, %c0_15], %16 {strides = array<i32>} : memref<8x8xf32, #tpu.memory_space<vmem>>, vector<8x8xf32>,
      %cst_16 = arith.constant 0.000000e+00 : f32
      %18 = vector.broadcast %cst_16 : f32 to vector<8x1xf32>
      %c0_17 = arith.constant 0 : index
      %c0_18 = arith.constant 0 : index
      %19 = vector.load %arg4[%c0_17, %c0_18] : memref<8x1xf32, #tpu.memory_space<vmem>>, vector<8x1xf32>
      tpu.vector_store %arg4[%c0_17, %c0_18], %18 {strides = array<i32>} : memref<8x1xf32, #tpu.memory_space<vmem>>, vector<8x1xf32>,
    } else {
    }
    %c0 = arith.constant 0 : index
    %c0_1 = arith.constant 0 : index
    %3 = vector.load %arg1[%c0, %c0_1] : memref<8x128xf32, #tpu.memory_space<vmem>>, vector<8x128xf32>
    %c0_2 = arith.constant 0 : index
    %c0_3 = arith.constant 0 : index
    %4 = vector.load %arg3[%c0_2, %c0_3] : memref<8x8xf32, #tpu.memory_space<vmem>>, vector<8x8xf32>
    %cst = arith.constant dense<0.000000e+00> : vector<8x8xf32>
    %5 = tpu.matmul %3, %3, %cst {dimension_numbers = #tpu.dot_dimension_numbers<[1], [1], [0], [0], [0, 0, 1, 0], [], []>} : vector<8x128xf32>, vector<8x128xf32>, vector<8x8xf32> -> vector<8x8xf32>
    %6 = arith.addf %4, %5 : vector<8x8xf32>
    %c0_4 = arith.constant 0 : index
    %c0_5 = arith.constant 0 : index
    %7 = vector.load %arg3[%c0_4, %c0_5] : memref<8x8xf32, #tpu.memory_space<vmem>>, vector<8x8xf32>
    tpu.vector_store %arg3[%c0_4, %c0_5], %6 {strides = array<i32>} : memref<8x8xf32, #tpu.memory_space<vmem>>, vector<8x8xf32>,
    %c0_6 = arith.constant 0 : index
    %c0_7 = arith.constant 0 : index
    %8 = vector.load %arg4[%c0_6, %c0_7] : memref<8x1xf32, #tpu.memory_space<vmem>>, vector<8x1xf32>
    %cst_8 = arith.constant dense<0.000000e+00> : vector<8xf32>
    %9 = vector.multi_reduction <add>, %3, %cst_8 [1] : vector<8x128xf32> to vector<8xf32>
    %10 = vector.shape_cast %9 : vector<8xf32> to vector<8x1xf32>
    %11 = arith.addf %8, %10 : vector<8x1xf32>
    %c0_9 = arith.constant 0 : index
    %c0_10 = arith.constant 0 : index
    %12 = vector.load %arg4[%c0_9, %c0_10] : memref<8x1xf32, #tpu.memory_space<vmem>>, vector<8x1xf32>
    tpu.vector_store %arg4[%c0_9, %c0_10], %11 {strides = array<i32>} : memref<8x1xf32, #tpu.memory_space<vmem>>, vector<8x1xf32>,
    %c0_i32_11 = arith.constant 0 : i32
    %13 = arith.cmpi eq, %arg0, %c0_i32_11 : i32
    %14 = arith.extui %13 : i1 to i32
    %c0_i32_12 = arith.constant 0 : i32
    %15 = arith.cmpi ne, %14, %c0_i32_12 : i32
    scf.if %15 {
      %c0_13 = arith.constant 0 : index
      %c0_14 = arith.constant 0 : index
      %16 = vector.load %arg4[%c0_13, %c0_14] : memref<8x1xf32, #tpu.memory_space<vmem>>, vector<8x1xf32>
      %cst_15 = arith.constant dense<0.000000e+00> : vector<8xf32>
      %17 = vector.multi_reduction <add>, %16, %cst_15 [1] : vector<8x1xf32> to vector<8xf32>
      %18 = vector.shape_cast %17 : vector<8xf32> to vector<8x1xf32>
      %c0_16 = arith.constant 0 : index
      %c0_17 = arith.constant 0 : index
      %19 = vector.load %arg3[%c0_16, %c0_17] : memref<8x8xf32, #tpu.memory_space<vmem>>, vector<8x8xf32>
      %20 = tpu.transpose %18, [1, 0] : vector<8x1xf32> -> vector<1x8xf32>
      %21 = vector.broadcast %18 : vector<8x1xf32> to vector<8x8xf32>
      %22 = vector.broadcast %20 : vector<1x8xf32> to vector<8x8xf32>
      %23 = arith.mulf %21, %22 : vector<8x8xf32>
      %cst_18 = arith.constant 7.812500e-03 : f32
      %24 = vector.broadcast %cst_18 : f32 to vector<8x8xf32>
      %25 = arith.mulf %23, %24 : vector<8x8xf32>
      %26 = arith.subf %19, %25 : vector<8x8xf32>
      %27 = tpu.iota {dimensions = array<i32: 0>} : vector<8x8xi32>
      %28 = tpu.iota {dimensions = array<i32: 1>} : vector<8x8xi32>
      %29 = arith.cmpi eq, %27, %28 : vector<8x8xi32>
      %cst_19 = arith.constant 0.000000e+00 : f32
      %30 = vector.broadcast %cst_19 : f32 to vector<8x8xf32>
      %31 = arith.select %29, %26, %30 : vector<8x8xi1>, vector<8x8xf32>
      %cst_20 = arith.constant dense<0.000000e+00> : vector<8xf32>
      %32 = vector.multi_reduction <add>, %31, %cst_20 [1] : vector<8x8xf32> to vector<8xf32>
      %33 = vector.shape_cast %32 : vector<8xf32> to vector<8x1xf32>
      %34 = math.rsqrt %33 : vector<8x1xf32>
      %35 = vector.broadcast %34 : vector<8x1xf32> to vector<8x8xf32>
      %36 = arith.mulf %26, %35 : vector<8x8xf32>
      %37 = tpu.transpose %34, [1, 0] : vector<8x1xf32> -> vector<1x8xf32>
      %38 = vector.broadcast %37 : vector<1x8xf32> to vector<8x8xf32>
      %39 = arith.mulf %36, %38 : vector<8x8xf32>
      %cst_21 = arith.constant -1.000000e+00 : f32
      %cst_22 = arith.constant 1.000000e+00 : f32
      %40 = vector.broadcast %cst_21 : f32 to vector<8x8xf32>
      %41 = arith.maximumf %40, %39 : vector<8x8xf32>
      %42 = vector.broadcast %cst_22 : f32 to vector<8x8xf32>
      %43 = arith.minimumf %42, %41 : vector<8x8xf32>
      %44 = arith.cmpi sgt, %28, %27 : vector<8x8xi32>
      %45 = math.absf %43 : vector<8x8xf32>
      %cst_23 = arith.constant 0.000000e+00 : f32
      %46 = vector.broadcast %cst_23 : f32 to vector<8x8xf32>
      %47 = arith.select %44, %45, %46 : vector<8x8xi1>, vector<8x8xf32>
      %48 = vector.shape_cast %47 : vector<8x8xf32> to vector<1x8x8xf32>
      %cst_24 = arith.constant dense<0.000000e+00> : vector<1xf32>
      %49 = vector.multi_reduction <add>, %48, %cst_24 [1, 2] : vector<1x8x8xf32> to vector<1xf32>
      %50 = vector.shape_cast %49 : vector<1xf32> to vector<1x1x1xf32>
      %51 = vector.extract %50[0, 0, 0] : f32 from vector<1x1x1xf32>
      %cst_25 = arith.constant 6.400000e+01 : f32
      %52 = arith.divf %51, %cst_25 : f32
      %c0_26 = arith.constant 0 : index
      %c0_27 = arith.constant 0 : index
      %53 = memref.load %arg2[%c0_26, %c0_27] : memref<1x1xf32, #tpu.memory_space<smem>>
      memref.store %52, %arg2[%c0_26, %c0_27] : memref<1x1xf32, #tpu.memory_space<smem>>
    } else {
    }
    return
  }
  func.func @transform_0(%arg0: i32) -> (i32, i32) {
    %c0_i32 = arith.constant 0 : i32
    %c0_i32_0 = arith.constant 0 : i32
    return %c0_i32, %arg0 : i32, i32
  }
  func.func @transform_1(%arg0: i32) -> (i32, i32) {
    %c0_i32 = arith.constant 0 : i32
    %c0_i32_0 = arith.constant 0 : i32
    %c0_i32_1 = arith.constant 0 : i32
    return %c0_i32, %c0_i32_0 : i32, i32
  }
}

</mosaic_0001>

<bundles_post_ra>
// kernel: tpu_custom_call.1
= control target key start
LH: loop header
LB: loop body
LE: loop exit
PB: predicated region body
PF: predicated region fallthrough
CT: control target
= control target key end

     0   :  { %6 = vsyncpa [#allocation5], 0  ;;  %s341_s0 = inlined_call_operand.hbm [shape: f32[8,128], index: 0, kind: input, shape index: {}]   ;;  %s342_s1 = inlined_call_operand.hbm [shape: f32[1,1], index: 1, kind: output, shape index: {}]  }
   0x1   :  { %7 = vsyncpa [#allocation6], 0  ;;  %s296_s6 = smov [#allocation4]   ;;  %s260_s10 = scalar_lea.hbm %s341_s0, 128 }
   0x2   :  { %s14_s7 = sshll.u32 %s296_s6, 4  ;;  %p261_p0 = scmp.ne.s32.totalorder %s341_s0, %s260_s10  ;;  %s15_s7 = int_to_ptr.vmem [resolvable:$true] %s14_s7 }
   0x3   :  { %p264_p1 = scmp.lt.u32.totalorder %s260_s10, %s341_s0 }
   0x5   :  { %p266_p2 = pnand %p264_p1, %p261_p0 }
   0x7   :  { %269 = shalt.err (!%p266_p2)
}
   0x8   :  { %s270_s15 = scalar_lea.vmem %s15_s7, 128  ;;  %p275_p4 = scmp.lt.s32.totalorder %s15_s7, %s15_s7 }
   0x9   :  { %p271_p3 = scmp.ne.s32.totalorder %s15_s7, %s270_s15  ;;  %p276_p5 = scmp.lt.s32.totalorder %s270_s15, %s270_s15 }
   0xb   :  { %p277_p6 = por %p276_p5, %p275_p4 }
   0xd   :  { %p278_p7 = pnand %p277_p6, %p271_p3 }
   0xf   :  { %281 = shalt.err (!%p278_p7)
}
  0x10   :  { %17 = dma.hbm_to_vmem [thread:$0]  %s341_s0, 128, %s15_s7, [#allocation5]  }
  0x11   :  { %292 = dma.done.wait [#allocation5], 128  }
  0x12   :  { %293 = vsyncadd [#allocation5], 4294967168  ;;  %vm27_vm0 = vcmask 7168   ;;  %v297_v0 = vmov 0.0   ;;  %vm298_vm1 = vmmov 0   ;;  %v29_v1 = vld [vmem:[#allocation4] sm:$0xff]  ;;  %v153_v11 = vlaneseq }
  0x13   :  { %28 = vst.msk [vmem:[#allocation3] sm:$0xff] %vm27_vm0, %v297_v0  ;;  %245 = vmatprep.subr.mxu0 %v297_v0  ;;  %247 = vmatprep.mubr.msk.f32.mxu0 %vm298_vm1, %v297_v0  ;;  %v299_v2 = vmov 0   ;;  %vm25_vm2 = vcmask 64512   ;;  %s282_s21 = scalar_lea.hbm %s342_s1, 16 }
  0x14   :  { %105 = vadd.xlane.f32.xlu0 %v29_v1  ;;  %246 = vmatpush3.xpose.msra.mxu0 %v29_v1  ;;  %26 = vst.msk [vmem:[#allocation2] sm:$0xff] %vm25_vm2, %v297_v0  ;;  %v154_v12 = vshrl.u32 %v153_v11, 7  ;;  %v163_v17 = vand.u32 127, %v153_v11  ;;  %p283_p8 = scmp.ne.s32.totalorder %s342_s1, %s282_s21  ;;  %p286_p9 = scmp.lt.u32.totalorder %s282_s21, %s342_s1 }
  0x15   :  { %257 = vset.pattern.permute.xlu0 %v299_v2 }
  0x16   :  { %v155_v13 = vsub.s32 0, %v154_v12  ;;  %vm164_vm3 = vcmp.eq.s32.totalorder %v154_v12, %v163_v17  ;;  %vm210_vm4 = vcmp.gt.s32.totalorder %v163_v17, %v154_v12  ;;  %p288_p10 = pnand %p286_p9, %p283_p8 }
  0x17   :  { %248 = vmatmul.mubr.f32.vlgmr.msra.gmra.mrb[0].mxu0 %v29_v1 }
  0x1a   :  { %v104_v3 = vld [vmem:[#allocation3] sm:$0xff] }
  0x1b   :  { %v30_v7 = vld [vmem:[#allocation2] sm:$0xff] }
  0xa1   :  { %v106_v4 = vpop.xlane.xlu0 %105 }
  0xa2   :  { %v107_v5 = vadd.f32 %v106_v4, %v104_v3 }
  0xa4   :  { %109 = vst.msk [vmem:[#allocation3] sm:$0xff] %vm27_vm0, %v107_v5 }
  0xab   :  { %v113_v6 = vld [vmem:[#allocation3] sm:$0xff] }
  0xac   :  { %116 = vxpose.xlu1.b32.start.end [1/1] (short) (narrow) %v113_v6, 8  ;;  %150 = vperm.xlu0 %257, %v113_v6  }
  0xea   :  { %v97_v8 = vpop.f32.mrb[0].mxu0 }
  0xeb   :  { %v101_v9 = vadd.f32 %v97_v8, %v30_v7  ;;  %v249_v10 = vpop.f32.mrb[1].mxu0 }
  0xed   :  { %103 = vst.msk [vmem:[#allocation2] sm:$0xff] %vm25_vm2, %v101_v9 }
  0xf4   :  { %v115_v19 = vld [vmem:[#allocation2] sm:$0xff] }
 0x12b   :  { %v151_v16 = vpop.permute.xlu0 %150 }
 0x12c   :  { %v132_v14 = vpop.trf.xlu1 }
 0x12d   :  { %v156_v15 = vrot.slane %v132_v14, %v155_v13 }
 0x12f   :  { %v157_v18 = vmul.f32 %v156_v15, %v151_v16 }
 0x131   :  { %v158_v20 = vmul.f32 0.0078125, %v157_v18 }
 0x133   :  { %v159_v21 = vsub.f32 %v115_v19, %v158_v20 }
 0x135   :  { %v165_v22 = vsel %vm164_vm3, %v159_v21, 0.0 }
 0x136   :  { %v166_v23 = vsel %vm25_vm2, %v165_v22, 0.0 }
 0x137   :  { %167 = vadd.xlane.f32.xlu1 %v166_v23 }
 0x1c4   :  { %v168_v24 = vpop.xlane.xlu1 %167 }
 0x1c5   :  { %258 = vrsqrt.f32 %v168_v24 }
 0x1cf   :  { %v259_v25 = vpop.eup %258 }
 0x1d0   :  { %171 = vxpose.xlu1.b32.start.end [1/1] (short) (narrow) %v259_v25, 8  ;;  %v170_v27 = vmul.f32 %v259_v25, %v159_v21 }
 0x250   :  { %v187_v26 = vpop.trf.xlu1 }
 0x251   :  { %v206_v28 = vrot.slane %v187_v26, %v155_v13 }
 0x253   :  { %v207_v29 = vmul.f32 %v206_v28, %v170_v27 }
 0x255   :  { %v242_v30 = vclamps-f32 %v207_v29, 1.0 }
 0x257   :  { %v211_v31 = vand.u32 2147483647, %v242_v30 }
 0x259   :  { %v212_v32 = vsel %vm210_vm4, %v211_v31, 0.0 }
 0x25a   :  { %v213_v33 = vsel %vm25_vm2, %v212_v32, 0.0 }
 0x25b   :  { %214 = vadd.xlane.f32.xlu0 %v213_v33 }
 0x2e8   :  { %v215_v34 = vpop.xlane.xlu0 %214 }
 0x2e9   :  { %v216_v35 = vrot.slane %v215_v34, 4 }
 0x2eb   :  { %v217_v36 = vadd.f32 %v216_v35, %v215_v34 }
 0x2ed   :  { %v218_v37 = vrot.slane %v217_v36, 2 }
 0x2ef   :  { %v219_v38 = vadd.f32 %v218_v37, %v217_v36 }
 0x2f1   :  { %v220_v39 = vrot.slane %v219_v38, 1 }
 0x2f3   :  { %v221_v40 = vadd.f32 %v220_v39, %v219_v38 }
 0x2f5   :  { %250 = vpush %v221_v40 }
 0x326   :  { %s251_s0 = spop %250 }
 0x327   :  { %s225_s18 = smul.f32 0.015625, %s251_s0 }
 0x329   :  { %227 = sst [smem:[#allocation7]] %s225_s18 }
 0x32a   :  { %291 = shalt.err (!%p288_p10)
}
 0x32b   :  { %s300_s26 = smov [#allocation7]  }
 0x32c   :  { %235 = dma.smem_to_hbm %s300_s26, 16, %s342_s1, [#allocation6]  }
 0x32d   :  { %294 = dma.done.wait [#allocation6], 16  }
 0x32e   :  { %295 = vsyncadd [#allocation6], 4294967280 }
 0x32f   :  { %239 = sfence }
 0x330   :  { %240 = vsyncpa [#allocation5], 1 }
 0x331   :  { %241 = vsyncpa [#allocation6], 1 }

</bundles_post_ra>
